<compile_context>
chip_gen: v7x
topology: tpu7x:2x2x1
jax: 0.10.0
libtpu: 0.0.40
codegen_flags: <defaults>
</compile_context>

<pallas_src>
import functools

import jax
import jax.numpy as jnp
from jax.experimental import pallas as pl
from jax.experimental.pallas import tpu as pltpu

EPS = 1e-5


# ---------------------------------------------------------------------------
# Fused single-block kernel (stats + normalize in one pass).
# ---------------------------------------------------------------------------
def _bn_fused_kernel(x_ref, gamma_ref, beta_ref, o_ref):
    # x_ref: (N, C, HW) f32;  gamma_ref/beta_ref: (1, C, 1) f32.
    x = x_ref[...]
    inv_m = 1.0 / float(x.shape[0] * x.shape[2])
    # Per-channel sum and sum-of-squares (single pass over x; no `centered`
    # copy kept live -> roughly half the vreg pressure of the old version).
    s = jnp.sum(jnp.sum(x, axis=2, keepdims=True), axis=0, keepdims=True)
    ss = jnp.sum(jnp.sum(x * x, axis=2, keepdims=True), axis=0, keepdims=True)
    mean = s * inv_m
    var = ss * inv_m - mean * mean          # biased variance (E[x^2]-mean^2)
    inv_std = jax.lax.rsqrt(var + EPS)
    # Fold mean / inv_std / gamma / beta into one per-channel FMA.
    scale = inv_std * gamma_ref[...]
    shift = beta_ref[...] - mean * scale
    o_ref[...] = x * scale + shift


# ---------------------------------------------------------------------------
# Tiled two-pass path: pass 1 accumulates per-channel sum / sumsq over batch
# tiles and emits the folded per-channel scale/shift; pass 2 normalizes.
# ---------------------------------------------------------------------------
def _bn_stats_kernel(x_ref, gamma_ref, beta_ref, scale_ref, shift_ref,
                     sum_sc, ssq_sc, *, inv_m):
    i = pl.program_id(0)

    @pl.when(i == 0)
    def _():
        sum_sc[...] = jnp.zeros_like(sum_sc)
        ssq_sc[...] = jnp.zeros_like(ssq_sc)

    x = x_ref[...]                          # (TN, C, HW)
    sum_sc[...] += jnp.sum(jnp.sum(x, axis=2, keepdims=True),
                           axis=0, keepdims=True)
    ssq_sc[...] += jnp.sum(jnp.sum(x * x, axis=2, keepdims=True),
                           axis=0, keepdims=True)

    @pl.when(i == pl.num_programs(0) - 1)
    def _():
        mean = sum_sc[...] * inv_m
        var = ssq_sc[...] * inv_m - mean * mean
        inv_std = jax.lax.rsqrt(var + EPS)
        scale = inv_std * gamma_ref[...]
        scale_ref[...] = scale
        shift_ref[...] = beta_ref[...] - mean * scale


def _bn_norm_kernel(x_ref, scale_ref, shift_ref, o_ref):
    # Single per-channel FMA per element.
    o_ref[...] = x_ref[...] * scale_ref[...] + shift_ref[...]


# ---------------------------------------------------------------------------
# Wrapper
# ---------------------------------------------------------------------------
def batchnorm2d_pallas(x_nchw, gamma, beta, *,
                       fused_vmem_budget_bytes=8 * 1024 * 1024,
                       tile_budget_bytes=2 * 1024 * 1024):
    """x_nchw: (N, C, H, W) float32; gamma/beta: (C,) float32."""
    n, c, h, w = x_nchw.shape
    hw = h * w
    itemsize = 4  # float32

    # Free reshapes (no transpose, no extra HBM pass).
    x3d = x_nchw.reshape(n, c, hw)
    g3d = gamma.reshape(1, c, 1)
    b3d = beta.reshape(1, c, 1)

    param_spec = pl.BlockSpec((1, c, 1), lambda i: (0, 0, 0))
    x_bytes = n * c * hw * itemsize

    if 2 * x_bytes <= fused_vmem_budget_bytes:
        # ----- fused single-pass path (the spec shape lands here) -----
        out3d = pl.pallas_call(
            _bn_fused_kernel,
            out_shape=jax.ShapeDtypeStruct((n, c, hw), jnp.float32),
            grid_spec=pl.GridSpec(
                grid=(1,),
                in_specs=[
                    pl.BlockSpec((n, c, hw), lambda i: (0, 0, 0)),
                    param_spec,
                    param_spec,
                ],
                out_specs=pl.BlockSpec((n, c, hw), lambda i: (0, 0, 0)),
            ),
            compiler_params=pltpu.CompilerParams(
                dimension_semantics=("arbitrary",)),
        )(x3d, g3d, b3d)
        return out3d.reshape(n, c, h, w)

    # ----- tiled two-pass path (keeps VMEM bounded for large N*H*W) -----
    per_image_bytes = c * hw * itemsize
    tn = 1
    for cand in range(n, 0, -1):
        if n % cand == 0 and cand * per_image_bytes <= tile_budget_bytes:
            tn = cand
            break
    grid = (n // tn,)
    inv_m = 1.0 / float(n * hw)
    x_spec = pl.BlockSpec((tn, c, hw), lambda i: (i, 0, 0))

    scale, shift = pl.pallas_call(
        functools.partial(_bn_stats_kernel, inv_m=inv_m),
        out_shape=(jax.ShapeDtypeStruct((1, c, 1), jnp.float32),
                   jax.ShapeDtypeStruct((1, c, 1), jnp.float32)),
        grid_spec=pltpu.PrefetchScalarGridSpec(
            num_scalar_prefetch=0,
            grid=grid,
            in_specs=[x_spec, param_spec, param_spec],
            out_specs=[param_spec, param_spec],
            scratch_shapes=[pltpu.VMEM((1, c, 1), jnp.float32),
                            pltpu.VMEM((1, c, 1), jnp.float32)],
        ),
        compiler_params=pltpu.CompilerParams(
            dimension_semantics=("arbitrary",)),
    )(x3d, g3d, b3d)

    out3d = pl.pallas_call(
        _bn_norm_kernel,
        out_shape=jax.ShapeDtypeStruct((n, c, hw), jnp.float32),
        grid_spec=pl.GridSpec(
            grid=grid,
            in_specs=[x_spec, param_spec, param_spec],
            out_specs=x_spec,
        ),
        compiler_params=pltpu.CompilerParams(
            dimension_semantics=("parallel",)),
    )(x3d, scale, shift)
    return out3d.reshape(n, c, h, w)


def _reference(x_nchw, gamma, beta):
    mean = jnp.mean(x_nchw, axis=(0, 2, 3), keepdims=True)
    var = jnp.mean((x_nchw - mean) ** 2, axis=(0, 2, 3), keepdims=True)
    return (x_nchw - mean) * jax.lax.rsqrt(var + EPS) * gamma.reshape(
        1, -1, 1, 1) + beta.reshape(1, -1, 1, 1)


if __name__ == "__main__":
    key = jax.random.PRNGKey(0)
    kx, kg, kb, kx2 = jax.random.split(key, 4)

    # Shape from the module: x144 = torch.randn([1, 128, 14, 14])
    N, C, H, W = 1, 128, 14, 14
    x = jax.random.normal(kx, (N, C, H, W), dtype=jnp.float32)

    # Deterministic affine parameters (PyTorch defaults are ones/zeros; random
    # values exercise the affine path deterministically).
    gamma = 1.0 + 0.1 * jax.random.normal(kg, (C,), dtype=jnp.float32)
    beta = 0.1 * jax.random.normal(kb, (C,), dtype=jnp.float32)

    # Fused single-pass path (spec shape).
    out = jax.block_until_ready(batchnorm2d_pallas(x, gamma, beta))
    ref = _reference(x, gamma, beta)
    assert out.shape == (N, C, H, W)
    assert jnp.max(jnp.abs(out - ref)) < 1e-4

    # Also exercise the tiled two-pass path (forced via tiny budgets) so the
    # scalable variant is verified too.
    x_big = jax.random.normal(kx2, (8, C, H, W), dtype=jnp.float32)
    out_big = jax.block_until_ready(
        batchnorm2d_pallas(x_big, gamma, beta,
                           fused_vmem_budget_bytes=0,
                           tile_budget_bytes=256 * 1024))
    ref_big = _reference(x_big, gamma, beta)
    assert out_big.shape == x_big.shape
    assert jnp.max(jnp.abs(out_big - ref_big)) < 2e-4

    print("KERNEL_OK")
</pallas_src>

<mosaic_0001>
module attributes {stable_mosaic.version = 11 : i64} {
  func.func @_bn_fused_kernel(%arg0: i32, %arg1: memref<1x128x196xf32, #tpu.memory_space<vmem>>, %arg2: memref<1x128x1xf32, #tpu.memory_space<vmem>>, %arg3: memref<1x128x1xf32, #tpu.memory_space<vmem>>, %arg4: memref<1x128x196xf32, #tpu.memory_space<vmem>>) attributes {dimension_semantics = [#tpu.dimension_semantics<arbitrary>], iteration_bounds = array<i64: 1>, scalar_prefetch = 0 : i64, scratch_operands = 0 : i64, tpu.core_type = #tpu.core_type<tc>, window_params = [{pipeline_mode = #tpu.pipeline_mode<synchronous>, transform_indices = @transform_0, window_bounds = array<i64: 1, 128, 196>}, {pipeline_mode = #tpu.pipeline_mode<synchronous>, transform_indices = @transform_1, window_bounds = array<i64: 1, 128, 1>}, {pipeline_mode = #tpu.pipeline_mode<synchronous>, transform_indices = @transform_2, window_bounds = array<i64: 1, 128, 1>}, {pipeline_mode = #tpu.pipeline_mode<synchronous>, transform_indices = @transform_3, window_bounds = array<i64: 1, 128, 196>}]} {
    %c0 = arith.constant 0 : index
    %c0_0 = arith.constant 0 : index
    %c0_1 = arith.constant 0 : index
    %0 = vector.load %arg1[%c0, %c0_0, %c0_1] : memref<1x128x196xf32, #tpu.memory_space<vmem>>, vector<1x128x196xf32>
    %cst = arith.constant dense<0.000000e+00> : vector<1x128xf32>
    %1 = vector.multi_reduction <add>, %0, %cst [2] : vector<1x128x196xf32> to vector<1x128xf32>
    %2 = vector.shape_cast %1 : vector<1x128xf32> to vector<1x128x1xf32>
    %cst_2 = arith.constant dense<0.000000e+00> : vector<128x1xf32>
    %3 = vector.multi_reduction <add>, %2, %cst_2 [0] : vector<1x128x1xf32> to vector<128x1xf32>
    %4 = vector.shape_cast %3 : vector<128x1xf32> to vector<1x128x1xf32>
    %5 = arith.mulf %0, %0 : vector<1x128x196xf32>
    %cst_3 = arith.constant dense<0.000000e+00> : vector<1x128xf32>
    %6 = vector.multi_reduction <add>, %5, %cst_3 [2] : vector<1x128x196xf32> to vector<1x128xf32>
    %7 = vector.shape_cast %6 : vector<1x128xf32> to vector<1x128x1xf32>
    %cst_4 = arith.constant dense<0.000000e+00> : vector<128x1xf32>
    %8 = vector.multi_reduction <add>, %7, %cst_4 [0] : vector<1x128x1xf32> to vector<128x1xf32>
    %9 = vector.shape_cast %8 : vector<128x1xf32> to vector<1x128x1xf32>
    %cst_5 = arith.constant 0.00510204071 : f32
    %10 = vector.broadcast %cst_5 : f32 to vector<1x128x1xf32>
    %11 = arith.mulf %4, %10 : vector<1x128x1xf32>
    %cst_6 = arith.constant 0.00510204071 : f32
    %12 = vector.broadcast %cst_6 : f32 to vector<1x128x1xf32>
    %13 = arith.mulf %9, %12 : vector<1x128x1xf32>
    %14 = arith.mulf %11, %11 : vector<1x128x1xf32>
    %15 = arith.subf %13, %14 : vector<1x128x1xf32>
    %cst_7 = arith.constant 9.99999974E-6 : f32
    %16 = vector.broadcast %cst_7 : f32 to vector<1x128x1xf32>
    %17 = arith.addf %15, %16 : vector<1x128x1xf32>
    %18 = math.rsqrt %17 : vector<1x128x1xf32>
    %c0_8 = arith.constant 0 : index
    %c0_9 = arith.constant 0 : index
    %c0_10 = arith.constant 0 : index
    %19 = vector.load %arg2[%c0_8, %c0_9, %c0_10] : memref<1x128x1xf32, #tpu.memory_space<vmem>>, vector<1x128x1xf32>
    %20 = arith.mulf %18, %19 : vector<1x128x1xf32>
    %c0_11 = arith.constant 0 : index
    %c0_12 = arith.constant 0 : index
    %c0_13 = arith.constant 0 : index
    %21 = vector.load %arg3[%c0_11, %c0_12, %c0_13] : memref<1x128x1xf32, #tpu.memory_space<vmem>>, vector<1x128x1xf32>
    %22 = arith.mulf %11, %20 : vector<1x128x1xf32>
    %23 = arith.subf %21, %22 : vector<1x128x1xf32>
    %24 = vector.broadcast %20 : vector<1x128x1xf32> to vector<1x128x196xf32>
    %25 = arith.mulf %0, %24 : vector<1x128x196xf32>
    %26 = vector.broadcast %23 : vector<1x128x1xf32> to vector<1x128x196xf32>
    %27 = arith.addf %25, %26 : vector<1x128x196xf32>
    %c0_14 = arith.constant 0 : index
    %c0_15 = arith.constant 0 : index
    %c0_16 = arith.constant 0 : index
    %28 = vector.load %arg4[%c0_14, %c0_15, %c0_16] : memref<1x128x196xf32, #tpu.memory_space<vmem>>, vector<1x128x196xf32>
    tpu.vector_store %arg4[%c0_14, %c0_15, %c0_16], %27 {strides = array<i32>} : memref<1x128x196xf32, #tpu.memory_space<vmem>>, vector<1x128x196xf32>,
    return
  }
  func.func @transform_0(%arg0: i32) -> (i32, i32, i32) {
    %c0_i32 = arith.constant 0 : i32
    %c0_i32_0 = arith.constant 0 : i32
    %c0_i32_1 = arith.constant 0 : i32
    %c0_i32_2 = arith.constant 0 : i32
    return %c0_i32, %c0_i32_0, %c0_i32_1 : i32, i32, i32
  }
  func.func @transform_1(%arg0: i32) -> (i32, i32, i32) {
    %c0_i32 = arith.constant 0 : i32
    %c0_i32_0 = arith.constant 0 : i32
    %c0_i32_1 = arith.constant 0 : i32
    %c0_i32_2 = arith.constant 0 : i32
    return %c0_i32, %c0_i32_0, %c0_i32_1 : i32, i32, i32
  }
  func.func @transform_2(%arg0: i32) -> (i32, i32, i32) {
    %c0_i32 = arith.constant 0 : i32
    %c0_i32_0 = arith.constant 0 : i32
    %c0_i32_1 = arith.constant 0 : i32
    %c0_i32_2 = arith.constant 0 : i32
    return %c0_i32, %c0_i32_0, %c0_i32_1 : i32, i32, i32
  }
  func.func @transform_3(%arg0: i32) -> (i32, i32, i32) {
    %c0_i32 = arith.constant 0 : i32
    %c0_i32_0 = arith.constant 0 : i32
    %c0_i32_1 = arith.constant 0 : i32
    %c0_i32_2 = arith.constant 0 : i32
    return %c0_i32, %c0_i32_0, %c0_i32_1 : i32, i32, i32
  }
}

</mosaic_0001>

<bundles_post_ra>
// kernel: tpu_custom_call.1
= control target key start
LH: loop header
LB: loop body
LE: loop exit
PB: predicated region body
PF: predicated region fallthrough
CT: control target
= control target key end

     0   :  { %vm46_vm0 = vcmask 556032   ;;  %s1417_s0 = inlined_call_operand.vmem [shape: f32[1,128,196], index: 0, kind: input, shape index: {}]   ;;  %s1418_s1 = inlined_call_operand.vmem [shape: f32[1,128,1], index: 1, kind: input, shape index: {}]   ;;  %s1419_s2 = inlined_call_operand.vmem [shape: f32[1,128,1], index: 2, kind: input, shape index: {}]   ;;  %s1420_s3 = inlined_call_operand.vmem [shape: f32[1,128,196], index: 3, kind: output, shape index: {}]  }
   0x1   :  { %v734_v0 = vld [vmem:[%s1417_s0 + $0x20] sm:$0xff]  ;;  %v739_v1 = vld [vmem:[%s1417_s0 + $0x28] sm:$0xff]  ;;  %v756_v5 = vld [vmem:[%s1417_s0 + $0x30] sm:$0xff] }
   0x2   :  { %v744_v2 = vld [vmem:[%s1417_s0] sm:$0xff]  ;;  %v55_v3 = vsel %vm46_vm0, %v739_v1, 0.0  ;;  %v751_v4 = vld [vmem:[%s1417_s0 + $0x8] sm:$0xff]  ;;  %v761_v6 = vld [vmem:[%s1417_s0 + $0x38] sm:$0xff] }
   0x3   :  { %v56_v7 = vadd.f32 %v55_v3, %v734_v0  ;;  %v47_v8 = vsel %vm46_vm0, %v751_v4, 0.0  ;;  %v59_v9 = vsel %vm46_vm0, %v761_v6, 0.0  ;;  %v771_v10 = vld [vmem:[%s1417_s0 + $0x10] sm:$0xff]  ;;  %v776_v11 = vld [vmem:[%s1417_s0 + $0x18] sm:$0xff]  ;;  %v789_v15 = vld [vmem:[%s1417_s0 + $0x48] sm:$0xff]  ;;  %v128_v63 = vmul.f32 %v751_v4, %v751_v4 }
   0x4   :  { %v48_v12 = vadd.f32 %v47_v8, %v744_v2  ;;  %v51_v13 = vsel %vm46_vm0, %v776_v11, 0.0  ;;  %v784_v14 = vld [vmem:[%s1417_s0 + $0x58] sm:$0xff]  ;;  %v60_v16 = vadd.f32 %v59_v9, %v756_v5  ;;  %v796_v18 = vld [vmem:[%s1417_s0 + $0x50] sm:$0xff]  ;;  %v803_v20 = vld [vmem:[%s1417_s0 + $0x40] sm:$0xff]  ;;  %v63_v21 = vsel %vm46_vm0, %v789_v15, 0.0 }
   0x5   :  { %57 = vadd.xlane.f32.xlu1 %v56_v7  ;;  %v52_v17 = vadd.f32 %v51_v13, %v771_v10  ;;  %v67_v19 = vsel %vm46_vm0, %v784_v14, 0.0  ;;  %v810_v22 = vld [vmem:[%s1417_s0 + $0x78] sm:$0xff]  ;;  %v815_v23 = vld [vmem:[%s1417_s0 + $0x68] sm:$0xff]  ;;  %v64_v25 = vadd.f32 %v63_v21, %v803_v20  ;;  %v822_v26 = vld [vmem:[%s1417_s0 + $0x70] sm:$0xff]  ;;  %v130_v60 = vmul.f32 %v776_v11, %v776_v11 }
   0x6   :  { %49 = vadd.xlane.f32.xlu0 %v48_v12  ;;  %v68_v24 = vadd.f32 %v67_v19, %v796_v18  ;;  %v75_v27 = vsel %vm46_vm0, %v810_v22, 0.0  ;;  %v829_v28 = vld [vmem:[%s1417_s0 + $0x60] sm:$0xff]  ;;  %v71_v29 = vsel %vm46_vm0, %v815_v23, 0.0  ;;  %v836_v30 = vld [vmem:[%s1417_s0 + $0x98] sm:$0xff]  ;;  %v841_v31 = vld [vmem:[%s1417_s0 + $0x88] sm:$0xff]  ;;  %v129_v7 = vmul.f32 %v771_v10, %v771_v10 }
   0x7   :  { %1429 = vst [vmem:[#allocation2_spill] sm:$0xff] %v841_v31  ;;  %v76_v32 = vadd.f32 %v75_v27, %v822_v26  ;;  %v72_v33 = vadd.f32 %v71_v29, %v829_v28  ;;  %v848_v34 = vld [vmem:[%s1417_s0 + $0x90] sm:$0xff]  ;;  %v83_v35 = vsel %vm46_vm0, %v836_v30, 0.0  ;;  %v855_v36 = vld [vmem:[%s1417_s0 + $0x80] sm:$0xff]  ;;  %v79_v37 = vsel %vm46_vm0, %v841_v31, 0.0  ;;  %v862_v38 = vld [vmem:[%s1417_s0 + $0xb8] sm:$0xff] }
   0x8   :  { %1430 = vst [vmem:[#allocation3_spill] sm:$0xff] %v855_v36  ;;  %v867_v39 = vld [vmem:[%s1417_s0 + $0xa8] sm:$0xff]  ;;  %v84_v40 = vadd.f32 %v83_v35, %v848_v34  ;;  %v80_v41 = vadd.f32 %v79_v37, %v855_v36  ;;  %v874_v42 = vld [vmem:[%s1417_s0 + $0xb0] sm:$0xff]  ;;  %v91_v43 = vsel %vm46_vm0, %v862_v38, 0.0  ;;  %v881_v44 = vld [vmem:[%s1417_s0 + $0xa0] sm:$0xff]  ;;  %v163_v9 = vsel %vm46_vm0, %v130_v60, 0.0 }
   0x9   :  { %61 = vadd.xlane.f32.xlu1 %v60_v16  ;;  %1431 = vst [vmem:[#allocation4_spill] sm:$0xff] %v867_v39  ;;  %1432 = vst [vmem:[#allocation5_spill] sm:$0xff] %v881_v44  ;;  %v87_v45 = vsel %vm46_vm0, %v867_v39, 0.0  ;;  %v888_v46 = vld [vmem:[%s1417_s0 + $0xd8] sm:$0xff]  ;;  %v893_v47 = vld [vmem:[%s1417_s0 + $0xc8] sm:$0xff]  ;;  %v92_v48 = vadd.f32 %v91_v43, %v874_v42  ;;  %v127_v12 = vmul.f32 %v744_v2, %v744_v2  ;;  %v159_v16 = vsel %vm46_vm0, %v128_v63, 0.0 }
   0xa   :  { %53 = vadd.xlane.f32.xlu0 %v52_v17  ;;  %1433 = vst [vmem:[#allocation6_spill] sm:$0xff] %v893_v47  ;;  %v88_v49 = vadd.f32 %v87_v45, %v881_v44  ;;  %v900_v50 = vld [vmem:[%s1417_s0 + $0xd0] sm:$0xff]  ;;  %v99_v51 = vsel %vm46_vm0, %v888_v46, 0.0  ;;  %v907_v52 = vld [vmem:[%s1417_s0 + $0xc0] sm:$0xff]  ;;  %v95_v53 = vsel %vm46_vm0, %v893_v47, 0.0  ;;  %v914_v54 = vld [vmem:[%s1417_s0 + $0xf8] sm:$0xff]  ;;  %v134_v13 = vmul.f32 %v761_v6, %v761_v6 }
   0xb   :  { %1434 = vst [vmem:[#allocation7_spill] sm:$0xff] %v907_v52  ;;  %v919_v55 = vld [vmem:[%s1417_s0 + $0xe8] sm:$0xff]  ;;  %v100_v56 = vadd.f32 %v99_v51, %v900_v50  ;;  %v96_v57 = vadd.f32 %v95_v53, %v907_v52  ;;  %v926_v58 = vld [vmem:[%s1417_s0 + $0xf0] sm:$0xff]  ;;  %v107_v59 = vsel %vm46_vm0, %v914_v54, 0.0  ;;  %v935_v61 = vld [vmem:[%s1417_s0 + $0xe0] sm:$0xff]  ;;  %v132_v17 = vmul.f32 %v739_v1, %v739_v1 }
   0xc   :  { %1435 = vst [vmem:[#allocation8_spill] sm:$0xff] %v919_v55  ;;  %1436 = vst [vmem:[#allocation9_spill] sm:$0xff] %v935_v61  ;;  %v103_v62 = vsel %vm46_vm0, %v919_v55, 0.0  ;;  %v108_v3 = vadd.f32 %v107_v59, %v926_v58  ;;  %v164_v19 = vadd.f32 %v163_v9, %v129_v7  ;;  %v133_v21 = vmul.f32 %v756_v5, %v756_v5 }
   0xd   :  { %69 = vadd.xlane.f32.xlu1 %v68_v24  ;;  %v104_v8 = vadd.f32 %v103_v62, %v935_v61  ;;  %v160_v24 = vadd.f32 %v159_v16, %v127_v12  ;;  %v131_v27 = vmul.f32 %v734_v0, %v734_v0  ;;  %v138_v29 = vmul.f32 %v784_v14, %v784_v14 }
   0xe   :  { %65 = vadd.xlane.f32.xlu0 %v64_v25  ;;  %v171_v25 = vsel %vm46_vm0, %v134_v13, 0.0  ;;  %v137_v37 = vmul.f32 %v796_v18, %v796_v18  ;;  %v135_v43 = vmul.f32 %v803_v20, %v803_v20  ;;  %v142_v45 = vmul.f32 %v810_v22, %v810_v22 }
   0xf   :  { %v172_v35 = vadd.f32 %v171_v25, %v133_v21  ;;  %v141_v53 = vmul.f32 %v822_v26, %v822_v26  ;;  %v139_v59 = vmul.f32 %v829_v28, %v829_v28  ;;  %v146_v60 = vmul.f32 %v836_v30, %v836_v30 }
  0x10   :  { %v144_v63 = vmul.f32 %v841_v31, %v841_v31  ;;  %v145_v7 = vmul.f32 %v848_v34, %v848_v34  ;;  %v143_v12 = vmul.f32 %v855_v36, %v855_v36  ;;  %v150_v13 = vmul.f32 %v862_v38, %v862_v38 }
  0x11   :  { %77 = vadd.xlane.f32.xlu1 %v76_v32  ;;  %v167_v32 = vsel %vm46_vm0, %v132_v17, 0.0  ;;  %v195_v9 = vsel %vm46_vm0, %v146_v60, 0.0  ;;  %v148_v17 = vmul.f32 %v867_v39, %v867_v39  ;;  %v149_v21 = vmul.f32 %v874_v42, %v874_v42 }
  0x12   :  { %73 = vadd.xlane.f32.xlu0 %v72_v33  ;;  %v136_v33 = vmul.f32 %v789_v15, %v789_v15  ;;  %v191_v16 = vsel %vm46_vm0, %v144_v63, 0.0  ;;  %v203_v25 = vsel %vm46_vm0, %v150_v13, 0.0 }
  0x15   :  { %85 = vadd.xlane.f32.xlu1 %v84_v40  ;;  %v168_v40 = vadd.f32 %v167_v32, %v131_v27  ;;  %v147_v27 = vmul.f32 %v881_v44, %v881_v44  ;;  %v199_v32 = vsel %vm46_vm0, %v148_v17, 0.0 }
  0x16   :  { %81 = vadd.xlane.f32.xlu0 %v80_v41  ;;  %v179_v41 = vsel %vm46_vm0, %v138_v29, 0.0  ;;  %v154_v29 = vmul.f32 %v888_v46, %v888_v46 }
  0x17   :  { %v180_v51 = vadd.f32 %v179_v41, %v137_v37  ;;  %v153_v37 = vmul.f32 %v900_v50, %v900_v50 }
  0x18   :  { %v211_v41 = vsel %vm46_vm0, %v154_v29, 0.0 }
  0x19   :  { %93 = vadd.xlane.f32.xlu1 %v92_v48  ;;  %v175_v48 = vsel %vm46_vm0, %v136_v33, 0.0  ;;  %v152_v33 = vmul.f32 %v893_v47, %v893_v47 }
  0x1a   :  { %89 = vadd.xlane.f32.xlu0 %v88_v49  ;;  %v140_v49 = vmul.f32 %v815_v23, %v815_v23 }
  0x1c   :  { %v183_v62 = vsel %vm46_vm0, %v140_v49, 0.0  ;;  %v156_v49 = vmul.f32 %v919_v55, %v919_v55 }
  0x1d   :  { %101 = vadd.xlane.f32.xlu1 %v100_v56  ;;  %v176_v56 = vadd.f32 %v175_v48, %v135_v43  ;;  %v151_v43 = vmul.f32 %v907_v52, %v907_v52  ;;  %v207_v48 = vsel %vm46_vm0, %v152_v33, 0.0 }
  0x1e   :  { %97 = vadd.xlane.f32.xlu0 %v96_v57  ;;  %v187_v57 = vsel %vm46_vm0, %v142_v45, 0.0  ;;  %v158_v45 = vmul.f32 %v914_v54, %v914_v54  ;;  %v215_v60 = vsel %vm46_vm0, %v156_v49, 0.0 }
  0x21   :  { %109 = vadd.xlane.f32.xlu1 %v108_v3  ;;  %v188_v3 = vadd.f32 %v187_v57, %v141_v53  ;;  %v157_v53 = vmul.f32 %v926_v58, %v926_v58  ;;  %v219_v57 = vsel %vm46_vm0, %v158_v45, 0.0 }
  0x22   :  { %105 = vadd.xlane.f32.xlu0 %v104_v8  ;;  %v184_v8 = vadd.f32 %v183_v62, %v139_v59  ;;  %v155_v59 = vmul.f32 %v935_v61, %v935_v61 }
  0x23   :  { %v220_v62 = vadd.f32 %v219_v57, %v157_v53 }
  0x24   :  { %v216_v63 = vadd.f32 %v215_v60, %v155_v59 }
  0x25   :  { %165 = vadd.xlane.f32.xlu1 %v164_v19  ;;  %v196_v19 = vadd.f32 %v195_v9, %v145_v7 }
  0x26   :  { %161 = vadd.xlane.f32.xlu0 %v160_v24  ;;  %v192_v24 = vadd.f32 %v191_v16, %v143_v12 }
  0x29   :  { %173 = vadd.xlane.f32.xlu1 %v172_v35  ;;  %v204_v35 = vadd.f32 %v203_v25, %v149_v21 }
  0x2a   :  { %169 = vadd.xlane.f32.xlu0 %v168_v40  ;;  %v200_v40 = vadd.f32 %v199_v32, %v147_v27 }
  0x2d   :  { %181 = vadd.xlane.f32.xlu1 %v180_v51  ;;  %v212_v51 = vadd.f32 %v211_v41, %v153_v37 }
  0x2e   :  { %177 = vadd.xlane.f32.xlu0 %v176_v56  ;;  %v208_v56 = vadd.f32 %v207_v48, %v151_v43 }
  0x31   :  { %189 = vadd.xlane.f32.xlu1 %v188_v3  ;;  %v710_v3 = vmov 0  }
  0x32   :  { %185 = vadd.xlane.f32.xlu0 %v184_v8  ;;  %677 = vset.pattern.permute.xlu1 %v710_v3 }
  0x33   :  { %676 = vset.pattern.permute.xlu0 %v710_v3 }
  0x35   :  { %197 = vadd.xlane.f32.xlu1 %v196_v19 }
  0x36   :  { %193 = vadd.xlane.f32.xlu0 %v192_v24 }
  0x39   :  { %205 = vadd.xlane.f32.xlu1 %v204_v35 }
  0x3a   :  { %201 = vadd.xlane.f32.xlu0 %v200_v40 }
  0x3d   :  { %213 = vadd.xlane.f32.xlu1 %v212_v51 }
  0x3e   :  { %209 = vadd.xlane.f32.xlu0 %v208_v56 }
  0x41   :  { %221 = vadd.xlane.f32.xlu1 %v220_v62 }
  0x42   :  { %217 = vadd.xlane.f32.xlu0 %v216_v63 }
  0x92   :  { %v58_v7 = vpop.xlane.xlu1 %57 }
  0x93   :  { %v50_v8 = vpop.xlane.xlu0 %49  ;;  %v1039_v51 = vmul.f32 0.0051020407, %v58_v7 }
  0x94   :  { %v1033_v40 = vmul.f32 0.0051020407, %v50_v8 }
  0x96   :  { %v62_v9 = vpop.xlane.xlu1 %61  ;;  %v271_v53 = vmul.f32 %v1033_v40, %v1033_v40 }
  0x97   :  { %v54_v12 = vpop.xlane.xlu0 %53  ;;  %v1035_v43 = vmul.f32 0.0051020407, %v62_v9  ;;  %v273_v9 = vmul.f32 %v1039_v51, %v1039_v51 }
  0x98   :  { %v1029_v35 = vmul.f32 0.0051020407, %v54_v12 }
  0x99   :  { %v274_v62 = vmul.f32 %v1035_v43, %v1035_v43 }
  0x9a   :  { %v70_v13 = vpop.xlane.xlu1 %69  ;;  %v272_v45 = vmul.f32 %v1029_v35, %v1029_v35 }
  0x9b   :  { %v66_v16 = vpop.xlane.xlu0 %65  ;;  %v1049_v55 = vmul.f32 0.0051020407, %v70_v13 }
  0x9c   :  { %v1047_v12 = vmul.f32 0.0051020407, %v66_v16 }
  0x9d   :  { %v276_v16 = vmul.f32 %v1049_v55, %v1049_v55 }
  0x9e   :  { %v78_v17 = vpop.xlane.xlu1 %77 }
  0x9f   :  { %v74_v19 = vpop.xlane.xlu0 %73 }
  0xa2   :  { %v86_v21 = vpop.xlane.xlu1 %85 }
  0xa3   :  { %v1019_v24 = vpop.xlane.xlu0 %81 }
  0xa6   :  { %v94_v25 = vpop.xlane.xlu1 %93 }
  0xa7   :  { %v1021_v27 = vpop.xlane.xlu0 %89 }
  0xa8   :  { %v1097_v31 = vmul.f32 0.0051020407, %v1021_v27 }
  0xaa   :  { %v1023_v29 = vpop.xlane.xlu1 %101  ;;  %v281_v36 = vmul.f32 %v1097_v31, %v1097_v31 }
  0xab   :  { %v1025_v32 = vpop.xlane.xlu0 %97 }
  0xae   :  { %v1027_v33 = vpop.xlane.xlu1 %109 }
  0xaf   :  { %v1031_v37 = vpop.xlane.xlu0 %105 }
  0xb2   :  { %v166_v41 = vpop.xlane.xlu1 %165 }
  0xb3   :  { %v256_v48 = vmul.f32 0.0051020407, %v166_v41  ;;  %v162_v49 = vpop.xlane.xlu0 %161 }
  0xb4   :  { %v255_v56 = vmul.f32 0.0051020407, %v162_v49 }
  0xb5   :  { %v288_v57 = vsub.f32 %v256_v48, %v272_v45 }
  0xb6   :  { %v287_v59 = vsub.f32 %v255_v56, %v271_v53  ;;  %v174_v60 = vpop.xlane.xlu1 %173 }
  0xb7   :  { %v304_v63 = vadd.f32 1e-05, %v288_v57  ;;  %v258_v3 = vmul.f32 0.0051020407, %v174_v60  ;;  %v170_v8 = vpop.xlane.xlu0 %169  ;;  %v275_v57 = vmul.f32 %v1047_v12, %v1047_v12 }
  0xb8   :  { %v303_v7 = vadd.f32 1e-05, %v287_v59  ;;  %v257_v41 = vmul.f32 0.0051020407, %v170_v8  ;;  %v1055_v59 = vmul.f32 0.0051020407, %v74_v19 }
  0xb9   :  { %678 = vrsqrt.f32 %v304_v63  ;;  %v290_v49 = vsub.f32 %v258_v3, %v274_v62  ;;  %v1057_v62 = vmul.f32 0.0051020407, %v86_v21 }
  0xba   :  { %680 = vrsqrt.f32 %v303_v7  ;;  %v289_v45 = vsub.f32 %v257_v41, %v273_v9  ;;  %v182_v48 = vpop.xlane.xlu1 %181  ;;  %v336_v41 = vld [vmem:[%s1418_s1 + $0x8] sm:$0xff]  ;;  %v277_v19 = vmul.f32 %v1055_v59, %v1055_v59 }
  0xbb   :  { %v260_v53 = vmul.f32 0.0051020407, %v182_v48  ;;  %v178_v56 = vpop.xlane.xlu0 %177  ;;  %v306_v60 = vadd.f32 1e-05, %v290_v49  ;;  %v1062_v49 = vmul.f32 0.0051020407, %v78_v17  ;;  %v280_v21 = vmul.f32 %v1057_v62, %v1057_v62 }
  0xbc   :  { %v305_v61 = vadd.f32 1e-05, %v289_v45  ;;  %v259_v47 = vmul.f32 0.0051020407, %v178_v56  ;;  %v1071_v48 = vmul.f32 0.0051020407, %v94_v25 }
  0xbd   :  { %v292_v3 = vsub.f32 %v260_v53, %v276_v16  ;;  %v278_v44 = vmul.f32 %v1062_v49, %v1062_v49  ;;  %v1083_v25 = vmul.f32 0.0051020407, %v1023_v29 }
  0xbe   :  { %682 = vrsqrt.f32 %v305_v61  ;;  %v291_v13 = vsub.f32 %v259_v47, %v275_v57  ;;  %v190_v63 = vpop.xlane.xlu1 %189  ;;  %v335_v47 = vld [vmem:[%s1418_s1] sm:$0xff] }
  0xbf   :  { %v186_v8 = vpop.xlane.xlu0 %185  ;;  %684 = vrsqrt.f32 %v306_v60  ;;  %v308_v53 = vadd.f32 1e-05, %v292_v3  ;;  %v262_v17 = vmul.f32 0.0051020407, %v190_v63  ;;  %v337_v63 = vld [vmem:[%s1418_s1 + $0x10] sm:$0xff] }
  0xc0   :  { %v307_v9 = vadd.f32 1e-05, %v291_v13  ;;  %v261_v7 = vmul.f32 0.0051020407, %v186_v8  ;;  %v1076_v8 = vmul.f32 0.0051020407, %v1019_v24  ;;  %v282_v24 = vmul.f32 %v1071_v48, %v1071_v48 }
  0xc1   :  { %v294_v29 = vsub.f32 %v262_v17, %v278_v44  ;;  %v338_v44 = vld [vmem:[%s1418_s1 + $0x18] sm:$0xff] }
  0xc2   :  { %v198_v45 = vpop.xlane.xlu1 %197  ;;  %686 = vrsqrt.f32 %v307_v9  ;;  %v293_v16 = vsub.f32 %v261_v7, %v277_v19 }
  0xc3   :  { %v679_v61 = vpop.eup %678  ;;  %v264_v56 = vmul.f32 0.0051020407, %v198_v45  ;;  %v194_v57 = vpop.xlane.xlu0 %193  ;;  %688 = vrsqrt.f32 %v308_v53  ;;  %v1105_v53 = vmul.f32 0.0051020407, %v1027_v33  ;;  %v1113_v33 = vmul.f32 0.0051020407, %v1025_v32 }
  0xc4   :  { %v681_v60 = vpop.eup %680  ;;  %v1073_v13 = vmul.f32 %v679_v61, %v336_v41  ;;  %v263_v7 = vmul.f32 0.0051020407, %v194_v57  ;;  %v279_v61 = vmul.f32 %v1076_v8, %v1076_v8 }
  0xc5   :  { %v296_v52 = vsub.f32 %v264_v56, %v280_v21  ;;  %v1078_v39 = vmul.f32 %v681_v60, %v335_v47  ;;  %v309_v47 = vadd.f32 1e-05, %v293_v16 }
  0xc6   :  { %v206_v3 = vpop.xlane.xlu1 %205  ;;  %422 = vperm.xlu1 %677, %v1073_v13   ;;  %v295_v17 = vsub.f32 %v263_v7, %v279_v61  ;;  %v339_v61 = vld [vmem:[%s1418_s1 + $0x20] sm:$0xff] }
  0xc7   :  { %v312_v9 = vadd.f32 1e-05, %v296_v52  ;;  %v266_v41 = vmul.f32 0.0051020407, %v206_v3  ;;  %417 = vperm.xlu0 %676, %v1078_v39   ;;  %v202_v19 = vpop.xlane.xlu0 %201  ;;  %v284_v52 = vmul.f32 %v1083_v25, %v1083_v25 }
  0xc8   :  { %v683_v45 = vpop.eup %682  ;;  %v265_v27 = vmul.f32 0.0051020407, %v202_v19  ;;  %v311_v19 = vadd.f32 1e-05, %v295_v17  ;;  %v283_v17 = vmul.f32 %v1113_v33, %v1113_v33 }
  0xc9   :  { %690 = vrsqrt.f32 %v312_v9  ;;  %v298_v21 = vsub.f32 %v266_v41, %v282_v24  ;;  %v1094_v56 = vmul.f32 %v683_v45, %v337_v63  ;;  %v685_v60 = vpop.eup %684  ;;  %v310_v24 = vadd.f32 1e-05, %v294_v29 }
  0xca   :  { %v214_v57 = vpop.xlane.xlu1 %213  ;;  %692 = vrsqrt.f32 %v309_v47  ;;  %v1108_v41 = vmul.f32 %v685_v60, %v338_v44  ;;  %v286_v29 = vmul.f32 %v1105_v53, %v1105_v53  ;;  %v297_v60 = vsub.f32 %v265_v27, %v281_v36  ;;  %v340_v36 = vld [vmem:[%s1418_s1 + $0x28] sm:$0xff] }
  0xcb   :  { %v314_v16 = vadd.f32 1e-05, %v298_v21  ;;  %v268_v3 = vmul.f32 0.0051020407, %v214_v57  ;;  %427 = vperm.xlu1 %677, %v1094_v56   ;;  %v210_v63 = vpop.xlane.xlu0 %209 }
  0xcc   :  { %v687_v45 = vpop.eup %686  ;;  %v313_v27 = vadd.f32 1e-05, %v297_v60 }
  0xcd   :  { %694 = vrsqrt.f32 %v314_v16  ;;  %v300_v9 = vsub.f32 %v268_v3, %v284_v52  ;;  %v267_v52 = vmul.f32 0.0051020407, %v210_v63  ;;  %v1121_v44 = vmul.f32 %v687_v45, %v339_v61  ;;  %v344_v16 = vld [vmem:[%s1418_s1 + $0x48] sm:$0xff]  ;;  %v689_v3 = vpop.eup %688 }
  0xce   :  { %v222_v7 = vpop.xlane.xlu1 %221  ;;  %696 = vrsqrt.f32 %v310_v24 }
  0xcf   :  { %v316_v47 = vadd.f32 1e-05, %v300_v9  ;;  %v270_v21 = vmul.f32 0.0051020407, %v222_v7  ;;  %432 = vperm.xlu1 %677, %v1108_v41   ;;  %v218_v32 = vpop.xlane.xlu0 %217  ;;  %v1129_v9 = vmul.f32 0.0051020407, %v1031_v37  ;;  %v299_v45 = vsub.f32 %v267_v52, %v283_v17 }
  0xd0   :  { %v269_v7 = vmul.f32 0.0051020407, %v218_v32  ;;  %v346_v37 = vld [vmem:[%s1418_s1 + $0x58] sm:$0xff] }
  0xd1   :  { %698 = vrsqrt.f32 %v316_v47  ;;  %v302_v57 = vsub.f32 %v270_v21, %v286_v29  ;;  %v356_v29 = vmul.f32 %v689_v3, %v340_v36  ;;  %v285_v21 = vmul.f32 %v1129_v9, %v1129_v9  ;;  %v348_v3 = vld [vmem:[%s1418_s1 + $0x68] sm:$0xff]  ;;  %v342_v36 = vld [vmem:[%s1418_s1 + $0x38] sm:$0xff] }
  0xd2   :  { %700 = vrsqrt.f32 %v311_v19  ;;  %v341_v19 = vld [vmem:[%s1418_s1 + $0x30] sm:$0xff]  ;;  %v315_v52 = vadd.f32 1e-05, %v299_v45 }
  0xd3   :  { %v691_v63 = vpop.eup %690  ;;  %v318_v24 = vadd.f32 1e-05, %v302_v57  ;;  %437 = vperm.xlu1 %677, %v1121_v44   ;;  %v301_v57 = vsub.f32 %v269_v7, %v285_v21 }
  0xd4   :  { %v1135_v61 = vmul.f32 %v691_v63, %v344_v16  ;;  %v693_v47 = vpop.eup %692 }
  0xd5   :  { %702 = vrsqrt.f32 %v318_v24  ;;  %v1146_v16 = vmul.f32 %v693_v47, %v341_v19  ;;  %v317_v24 = vadd.f32 1e-05, %v301_v57  ;;  %v343_v47 = vld [vmem:[%s1418_s1 + $0x40] sm:$0xff]  ;;  %v368_v57 = vld [vmem:[%s1419_s2 + $0x8] sm:$0xff] }
  0xd6   :  { %462 = vperm.xlu0 %676, %v1135_v61   ;;  %704 = vrsqrt.f32 %v313_v27 }
  0xd7   :  { %v695_v60 = vpop.eup %694  ;;  %442 = vperm.xlu1 %677, %v356_v29   ;;  %706 = vrsqrt.f32 %v315_v52 }
  0xd8   :  { %v362_v32 = vmul.f32 %v695_v60, %v346_v37  ;;  %v697_v17 = vpop.eup %696  ;;  %v350_v37 = vld [vmem:[%s1418_s1 + $0x78] sm:$0xff]  ;;  %708 = vrsqrt.f32 %v317_v24  ;;  %v384_v60 = vmul.f32 %v1073_v13, %v1029_v35 }
  0xd9   :  { %v358_v7 = vmul.f32 %v697_v17, %v342_v36  ;;  %v345_v17 = vld [vmem:[%s1418_s1 + $0x50] sm:$0xff]  ;;  %v370_v35 = vld [vmem:[%s1419_s2 + $0x18] sm:$0xff] }
  0xda   :  { %472 = vperm.xlu0 %676, %v362_v32   ;;  %v400_v36 = vsub.f32 %v368_v57, %v384_v60  ;;  %v349_v60 = vld [vmem:[%s1418_s1 + $0x70] sm:$0xff] }
  0xdb   :  { %v699_v63 = vpop.eup %698  ;;  %447 = vperm.xlu1 %677, %v1146_v16  }
  0xdc   :  { %v364_v27 = vmul.f32 %v699_v63, %v348_v3  ;;  %v701_v45 = vpop.eup %700  ;;  %v386_v63 = vmul.f32 %v1108_v41, %v1035_v43  ;;  %v372_v43 = vld [vmem:[%s1419_s2 + $0x28] sm:$0xff] }
  0xdd   :  { %v359_v52 = vmul.f32 %v701_v45, %v343_v47  ;;  %v347_v45 = vld [vmem:[%s1418_s1 + $0x60] sm:$0xff]  ;;  %v388_v47 = vmul.f32 %v356_v29, %v1049_v55  ;;  %v374_v55 = vld [vmem:[%s1419_s2 + $0x38] sm:$0xff]  ;;  %v383_v29 = vmul.f32 %v1078_v39, %v1033_v40  ;;  %v369_v39 = vld [vmem:[%s1419_s2 + $0x10] sm:$0xff] }
  0xde   :  { %482 = vperm.xlu0 %676, %v364_v27  }
  0xdf   :  { %v703_v21 = vpop.eup %702  ;;  %452 = vperm.xlu1 %677, %v358_v7   ;;  %v404_v57 = vsub.f32 %v372_v43, %v388_v47  ;;  %v396_v47 = vmul.f32 %v364_v27, %v1083_v25  ;;  %v382_v25 = vld [vmem:[%s1419_s2 + $0x78] sm:$0xff]  ;;  %v391_v27 = vmul.f32 %v359_v52, %v1076_v8  ;;  %v379_v8 = vld [vmem:[%s1419_s2 + $0x60] sm:$0xff] }
  0xe0   :  { %v366_v19 = vmul.f32 %v703_v21, %v350_v37  ;;  %v705_v3 = vpop.eup %704  ;;  %v402_v37 = vsub.f32 %v370_v35, %v386_v63  ;;  %v392_v35 = vmul.f32 %v1135_v61, %v1057_v62  ;;  %v378_v62 = vld [vmem:[%s1419_s2 + $0x58] sm:$0xff]  ;;  %v387_v61 = vmul.f32 %v1121_v44, %v1047_v12  ;;  %v373_v12 = vld [vmem:[%s1419_s2 + $0x30] sm:$0xff] }
  0xe1   :  { %v361_v24 = vmul.f32 %v705_v3, %v345_v17  ;;  %v707_v13 = vpop.eup %706  ;;  %v390_v3 = vmul.f32 %v358_v7, %v1062_v49  ;;  %v376_v49 = vld [vmem:[%s1419_s2 + $0x48] sm:$0xff]  ;;  %v385_v7 = vmul.f32 %v1094_v56, %v1039_v51  ;;  %v371_v51 = vld [vmem:[%s1419_s2 + $0x20] sm:$0xff] }
  0xe2   :  { %492 = vperm.xlu0 %676, %v366_v19   ;;  %v363_v21 = vmul.f32 %v707_v13, %v347_v45  ;;  %v709_v41 = vpop.eup %708  ;;  %v408_v40 = vsub.f32 %v376_v49, %v392_v35  ;;  %v394_v45 = vmul.f32 %v362_v32, %v1071_v48  ;;  %v403_v43 = vsub.f32 %v371_v51, %v387_v61  ;;  %v380_v48 = vld [vmem:[%s1419_s2 + $0x68] sm:$0xff] }
  0xe3   :  { %457 = vperm.xlu1 %677, %v359_v52   ;;  %v365_v17 = vmul.f32 %v709_v41, %v349_v60  ;;  %v406_v63 = vsub.f32 %v374_v55, %v390_v3  ;;  %v389_v32 = vmul.f32 %v1146_v16, %v1055_v59  ;;  %v412_v44 = vsub.f32 %v380_v48, %v396_v47  ;;  %v375_v59 = vld [vmem:[%s1419_s2 + $0x40] sm:$0xff] }
  0xe4   :  { %v410_v56 = vsub.f32 %v378_v62, %v394_v45  ;;  %v398_v41 = vmul.f32 %v366_v19, %v1105_v53  ;;  %v393_v3 = vmul.f32 %v361_v24, %v1097_v31  ;;  %v377_v53 = vld [vmem:[%s1419_s2 + $0x50] sm:$0xff]  ;;  %v395_v55 = vmul.f32 %v363_v21, %v1113_v33 }
  0xe5   :  { %v405_v60 = vsub.f32 %v373_v12, %v389_v32  ;;  %v381_v31 = vld [vmem:[%s1419_s2 + $0x70] sm:$0xff] }
  0xe6   :  { %534 = vperm.xlu0 %676, %v400_v36   ;;  %v367_v36 = vld [vmem:[%s1419_s2] sm:$0xff]  ;;  %v414_v16 = vsub.f32 %v382_v25, %v398_v41  ;;  %v409_v19 = vsub.f32 %v377_v53, %v393_v3  ;;  %v411_v52 = vsub.f32 %v379_v8, %v395_v55 }
  0xe7   :  { %467 = vperm.xlu1 %677, %v361_v24   ;;  %v399_v13 = vsub.f32 %v367_v36, %v383_v29  ;;  %v397_v29 = vmul.f32 %v365_v17, %v1129_v9 }
  0xe9   :  { %v413_v24 = vsub.f32 %v381_v31, %v397_v29 }
  0xea   :  { %544 = vperm.xlu0 %676, %v402_v37   ;;  %v401_v37 = vsub.f32 %v369_v39, %v385_v7 }
  0xeb   :  { %477 = vperm.xlu1 %677, %v363_v21  }
  0xee   :  { %554 = vperm.xlu0 %676, %v404_v57   ;;  %v407_v57 = vsub.f32 %v375_v59, %v391_v27 }
  0xef   :  { %487 = vperm.xlu1 %677, %v365_v17  }
  0xf2   :  { %564 = vperm.xlu0 %676, %v406_v63  }
  0xf3   :  { %529 = vperm.xlu1 %677, %v399_v13  }
  0xf6   :  { %574 = vperm.xlu0 %676, %v408_v40  }
  0xf7   :  { %539 = vperm.xlu1 %677, %v401_v37  }
  0xfa   :  { %584 = vperm.xlu0 %676, %v410_v56  }
  0xfb   :  { %549 = vperm.xlu1 %677, %v403_v43  }
  0xfe   :  { %594 = vperm.xlu0 %676, %v412_v44  }
  0xff   :  { %559 = vperm.xlu1 %677, %v405_v60  }
 0x102   :  { %604 = vperm.xlu0 %676, %v414_v16  }
 0x103   :  { %569 = vperm.xlu1 %677, %v407_v57  }
 0x107   :  { %579 = vperm.xlu1 %677, %v409_v19  }
 0x10b   :  { %589 = vperm.xlu1 %677, %v411_v52  }
 0x10f   :  { %599 = vperm.xlu1 %677, %v413_v24  }
 0x145   :  { %v423_v36 = vpop.permute.xlu1 %422 }
 0x146   :  { %v418_v13 = vpop.permute.xlu0 %417  ;;  %v497_v37 = vmul.f32 %v423_v36, %v771_v10  ;;  %v498_v62 = vmul.f32 %v423_v36, %v776_v11 }
 0x147   :  { %v496_v59 = vmul.f32 %v418_v13, %v751_v4 }
 0x14a   :  { %v428_v63 = vpop.permute.xlu1 %427 }
 0x14b   :  { %v500_v4 = vmul.f32 %v428_v63, %v739_v1 }
 0x14e   :  { %v433_v35 = vpop.permute.xlu1 %432 }
 0x14f   :  { %v501_v43 = vmul.f32 %v433_v35, %v756_v5  ;;  %v502_v48 = vmul.f32 %v433_v35, %v761_v6 }
 0x152   :  { %v1241_v33 = vpop.permute.xlu1 %437 }
 0x153   :  { %v503_v1 = vmul.f32 %v1241_v33, %v803_v20  ;;  %v504_v36 = vmul.f32 %v1241_v33, %v789_v15 }
 0x155   :  { %v463_v21 = vpop.permute.xlu0 %462 }
 0x156   :  { %v443_v49 = vpop.permute.xlu1 %442  ;;  %v514_v55 = vmul.f32 %v463_v21, %v836_v30 }
 0x157   :  { %v505_v44 = vmul.f32 %v443_v49, %v796_v18  ;;  %v506_v5 = vmul.f32 %v443_v49, %v784_v14  ;;  %v495_v14 = vmul.f32 %v418_v13, %v744_v2  ;;  %v499_v2 = vmul.f32 %v428_v63, %v734_v0 }
 0x159   :  { %v473_v7 = vpop.permute.xlu0 %472 }
 0x15a   :  { %v1243_v39 = vpop.permute.xlu1 %447  ;;  %v517_v24 = vmul.f32 %v473_v7, %v874_v42  ;;  %v518_v0 = vmul.f32 %v473_v7, %v862_v38 }
 0x15b   :  { %v507_v33 = vmul.f32 %v1243_v39, %v829_v28  ;;  %v508_v49 = vmul.f32 %v1243_v39, %v815_v23  ;;  %v1437_v39 = vld [vmem:[#allocation3_spill] sm:$0xff] }
 0x15d   :  { %v1245_v40 = vpop.permute.xlu0 %482 }
 0x15e   :  { %v453_v9 = vpop.permute.xlu1 %452  ;;  %v521_v20 = vmul.f32 %v1245_v40, %v900_v50  ;;  %v522_v15 = vmul.f32 %v1245_v40, %v888_v46 }
 0x15f   :  { %v509_v27 = vmul.f32 %v453_v9, %v822_v26  ;;  %v510_v18 = vmul.f32 %v453_v9, %v810_v22  ;;  %v513_v22 = vmul.f32 %v463_v21, %v848_v34 }
 0x161   :  { %v1247_v17 = vpop.permute.xlu0 %492 }
 0x162   :  { %v1249_v45 = vpop.permute.xlu1 %457  ;;  %v525_v28 = vmul.f32 %v1247_v17, %v926_v58  ;;  %v526_v23 = vmul.f32 %v1247_v17, %v914_v54 }
 0x165   :  { %v535_v61 = vpop.permute.xlu0 %534 }
 0x166   :  { %v1253_v51 = vpop.permute.xlu1 %467  ;;  %v609_v56 = vadd.f32 %v535_v61, %v497_v37  ;;  %v610_v47 = vadd.f32 %v535_v61, %v498_v62  ;;  %v511_v62 = vmul.f32 %v1249_v45, %v1437_v39  ;;  %v1438_v61 = vld [vmem:[#allocation2_spill] sm:$0xff] }
 0x168   :  { %641 = vst [vmem:[%s1420_s3 + $0x10] sm:$0xff] %v609_v56  ;;  %642 = vst.msk [vmem:[%s1420_s3 + $0x18] sm:$0xff] %vm46_vm0, %v610_v47  ;;  %v512_v56 = vmul.f32 %v1249_v45, %v1438_v61  ;;  %v1439_v45 = vld [vmem:[#allocation5_spill] sm:$0xff] }
 0x169   :  { %v545_v10 = vpop.permute.xlu0 %544 }
 0x16a   :  { %v1264_v11 = vpop.permute.xlu1 %477  ;;  %v613_v32 = vadd.f32 %v545_v10, %v501_v43  ;;  %v614_v12 = vadd.f32 %v545_v10, %v502_v48  ;;  %v515_v10 = vmul.f32 %v1253_v51, %v1439_v45 }
 0x16c   :  { %645 = vst [vmem:[%s1420_s3 + $0x30] sm:$0xff] %v613_v32  ;;  %646 = vst.msk [vmem:[%s1420_s3 + $0x38] sm:$0xff] %vm46_vm0, %v614_v12  ;;  %v1440_v32 = vld [vmem:[#allocation4_spill] sm:$0xff] }
 0x16d   :  { %v555_v6 = vpop.permute.xlu0 %554  ;;  %v516_v12 = vmul.f32 %v1253_v51, %v1440_v32 }
 0x16e   :  { %v1275_v41 = vpop.permute.xlu1 %487  ;;  %v617_v60 = vadd.f32 %v555_v6, %v505_v44  ;;  %v618_v25 = vadd.f32 %v555_v6, %v506_v5 }
 0x170   :  { %649 = vst [vmem:[%s1420_s3 + $0x50] sm:$0xff] %v617_v60  ;;  %650 = vst.msk [vmem:[%s1420_s3 + $0x58] sm:$0xff] %vm46_vm0, %v618_v25  ;;  %v1441_v60 = vld [vmem:[#allocation7_spill] sm:$0xff] }
 0x171   :  { %v565_v16 = vpop.permute.xlu0 %564  ;;  %v519_v25 = vmul.f32 %v1264_v11, %v1441_v60 }
 0x172   :  { %v530_v57 = vpop.permute.xlu1 %529  ;;  %v621_v3 = vadd.f32 %v565_v16, %v509_v27  ;;  %v622_v53 = vadd.f32 %v565_v16, %v510_v18  ;;  %v1442_v27 = vld [vmem:[#allocation6_spill] sm:$0xff]  ;;  %v1443_v16 = vld [vmem:[#allocation9_spill] sm:$0xff] }
 0x173   :  { %v607_v26 = vadd.f32 %v530_v57, %v495_v14  ;;  %v608_v19 = vadd.f32 %v530_v57, %v496_v59  ;;  %v520_v18 = vmul.f32 %v1264_v11, %v1442_v27  ;;  %v523_v57 = vmul.f32 %v1275_v41, %v1443_v16 }
 0x174   :  { %653 = vst [vmem:[%s1420_s3 + $0x70] sm:$0xff] %v621_v3  ;;  %654 = vst.msk [vmem:[%s1420_s3 + $0x78] sm:$0xff] %vm46_vm0, %v622_v53  ;;  %v1444_v3 = vld [vmem:[#allocation8_spill] sm:$0xff] }
 0x175   :  { %639 = vst [vmem:[%s1420_s3] sm:$0xff] %v607_v26  ;;  %640 = vst.msk [vmem:[%s1420_s3 + $0x8] sm:$0xff] %vm46_vm0, %v608_v19  ;;  %v575_v30 = vpop.permute.xlu0 %574  ;;  %v524_v53 = vmul.f32 %v1275_v41, %v1444_v3 }
 0x176   :  { %v540_v34 = vpop.permute.xlu1 %539  ;;  %v625_v8 = vadd.f32 %v575_v30, %v513_v22  ;;  %v626_v52 = vadd.f32 %v575_v30, %v514_v55 }
 0x177   :  { %v611_v29 = vadd.f32 %v540_v34, %v499_v2  ;;  %v612_v31 = vadd.f32 %v540_v34, %v500_v4 }
 0x178   :  { %657 = vst [vmem:[%s1420_s3 + $0x90] sm:$0xff] %v625_v8  ;;  %658 = vst.msk [vmem:[%s1420_s3 + $0x98] sm:$0xff] %vm46_vm0, %v626_v52 }
 0x179   :  { %643 = vst [vmem:[%s1420_s3 + $0x20] sm:$0xff] %v611_v29  ;;  %644 = vst.msk [vmem:[%s1420_s3 + $0x28] sm:$0xff] %vm46_vm0, %v612_v31  ;;  %v585_v38 = vpop.permute.xlu0 %584 }
 0x17a   :  { %v550_v42 = vpop.permute.xlu1 %549  ;;  %v629_v63 = vadd.f32 %v585_v38, %v517_v24  ;;  %v630_v35 = vadd.f32 %v585_v38, %v518_v0 }
 0x17b   :  { %v615_v13 = vadd.f32 %v550_v42, %v503_v1  ;;  %v616_v21 = vadd.f32 %v550_v42, %v504_v36 }
 0x17c   :  { %661 = vst [vmem:[%s1420_s3 + $0xb0] sm:$0xff] %v629_v63  ;;  %662 = vst.msk [vmem:[%s1420_s3 + $0xb8] sm:$0xff] %vm46_vm0, %v630_v35 }
 0x17d   :  { %647 = vst [vmem:[%s1420_s3 + $0x40] sm:$0xff] %v615_v13  ;;  %648 = vst.msk [vmem:[%s1420_s3 + $0x48] sm:$0xff] %vm46_vm0, %v616_v21  ;;  %v595_v46 = vpop.permute.xlu0 %594 }
 0x17e   :  { %v560_v50 = vpop.permute.xlu1 %559  ;;  %v633_v7 = vadd.f32 %v595_v46, %v521_v20  ;;  %v634_v40 = vadd.f32 %v595_v46, %v522_v15 }
 0x17f   :  { %v619_v9 = vadd.f32 %v560_v50, %v507_v33  ;;  %v620_v37 = vadd.f32 %v560_v50, %v508_v49 }
 0x180   :  { %665 = vst [vmem:[%s1420_s3 + $0xd0] sm:$0xff] %v633_v7  ;;  %666 = vst.msk [vmem:[%s1420_s3 + $0xd8] sm:$0xff] %vm46_vm0, %v634_v40 }
 0x181   :  { %651 = vst [vmem:[%s1420_s3 + $0x60] sm:$0xff] %v619_v9  ;;  %652 = vst.msk [vmem:[%s1420_s3 + $0x68] sm:$0xff] %vm46_vm0, %v620_v37  ;;  %v605_v54 = vpop.permute.xlu0 %604 }
 0x182   :  { %v570_v58 = vpop.permute.xlu1 %569  ;;  %v637_v17 = vadd.f32 %v605_v54, %v525_v28  ;;  %v638_v47 = vadd.f32 %v605_v54, %v526_v23 }
 0x183   :  { %v623_v43 = vadd.f32 %v570_v58, %v511_v62  ;;  %v624_v48 = vadd.f32 %v570_v58, %v512_v56 }
 0x184   :  { %669 = vst [vmem:[%s1420_s3 + $0xf0] sm:$0xff] %v637_v17  ;;  %670 = vst.msk [vmem:[%s1420_s3 + $0xf8] sm:$0xff] %vm46_vm0, %v638_v47 }
 0x185   :  { %655 = vst [vmem:[%s1420_s3 + $0x80] sm:$0xff] %v623_v43  ;;  %656 = vst.msk [vmem:[%s1420_s3 + $0x88] sm:$0xff] %vm46_vm0, %v624_v48 }
 0x186   :  { %v580_v44 = vpop.permute.xlu1 %579 }
 0x187   :  { %v627_v5 = vadd.f32 %v580_v44, %v515_v10  ;;  %v628_v6 = vadd.f32 %v580_v44, %v516_v12 }
 0x189   :  { %659 = vst [vmem:[%s1420_s3 + $0xa0] sm:$0xff] %v627_v5  ;;  %660 = vst.msk [vmem:[%s1420_s3 + $0xa8] sm:$0xff] %vm46_vm0, %v628_v6 }
 0x18a   :  { %v590_v51 = vpop.permute.xlu1 %589 }
 0x18b   :  { %v631_v14 = vadd.f32 %v590_v51, %v519_v25  ;;  %v632_v59 = vadd.f32 %v590_v51, %v520_v18 }
 0x18d   :  { %663 = vst [vmem:[%s1420_s3 + $0xc0] sm:$0xff] %v631_v14  ;;  %664 = vst.msk [vmem:[%s1420_s3 + $0xc8] sm:$0xff] %vm46_vm0, %v632_v59 }
 0x18e   :  { %v600_v11 = vpop.permute.xlu1 %599 }
 0x18f   :  { %v635_v26 = vadd.f32 %v600_v11, %v523_v57  ;;  %v636_v19 = vadd.f32 %v600_v11, %v524_v53 }
 0x191   :  { %667 = vst [vmem:[%s1420_s3 + $0xe0] sm:$0xff] %v635_v26  ;;  %668 = vst.msk [vmem:[%s1420_s3 + $0xe8] sm:$0xff] %vm46_vm0, %v636_v19 }

</bundles_post_ra>
